<compile_context>
chip_gen: v6e
topology: v6e:2x2x1
jax: 0.10.0
libtpu: 0.0.40
codegen_flags: <defaults>
</compile_context>

<pallas_src>
import jax
import jax.numpy as jnp
from jax.experimental import pallas as pl
from jax.experimental.pallas import tpu as pltpu


def _round_up(x, m):
    return ((x + m - 1) // m) * m


# ------------------------------ fused kernel --------------------------------

def _make_fused_tcn_kernel(layer_meta, K, G, W, c_max_pad):
    """layer_meta: tuple of (cin_pad, cout_pad, dilation) per TCN block (static)."""
    L = len(layer_meta)

    def kernel(*refs):
        x_ref = refs[0]                       # (1, Cin_pad0, W)  gapped, batch-on-lanes
        mask_ref = refs[1]                    # (1, W) f32: 1.0 on real time columns
        pool_ref = refs[2]                    # (W, b_tile) f32 segment-sum matrix
        layer_refs = refs[3:3 + 2 * L]        # per layer: w (cout_p, K*cin_p), shift (cout_p, 1)
        fc_w_ref = refs[3 + 2 * L]            # (O_pad, H_pad), pre-scaled by 1/T
        fc_b_ref = refs[4 + 2 * L]            # (O_pad, 1)
        o_ref = refs[5 + 2 * L]               # (1, O_pad, b_tile)
        xp_ref = refs[6 + 2 * L]              # VMEM scratch (c_max_pad, W + 2*G)

        # Zero only the two outer halo strips, once per program.  The center
        # [G, G+W) is fully overwritten by every layer's store before it is
        # read, and the per-batch gap columns inside W arrive already zeroed.
        if G > 0:
            xp_ref[:, 0:G] = jnp.zeros((c_max_pad, G), jnp.float32)
            xp_ref[:, G + W:] = jnp.zeros((c_max_pad, G), jnp.float32)

        mask = mask_ref[...]                                  # (1, W)
        act = x_ref[0]                                        # (cin_pad0, W), gaps are 0
        for l, (cin_p, cout_p, dil) in enumerate(layer_meta):
            w_ref = layer_refs[2 * l]                         # (cout_p, K*cin_p), BN scale folded in
            b_ref = layer_refs[2 * l + 1]                     # (cout_p, 1) conv bias + BN shift
            pad = dil * (K - 1) // 2                          # 'same' padding (odd K)

            # One contiguous store of the whole batch tile per layer.
            xp_ref[0:cin_p, G:G + W] = act
            # K statically shifted views; the gap/halo columns supply the
            # zero padding, so no per-tap masking is needed.
            pieces = [
                xp_ref[0:cin_p, G - pad + k * dil:G - pad + k * dil + W]
                for k in range(K)
            ]
            rhs = jnp.concatenate(pieces, axis=0) if K > 1 else pieces[0]   # (K*cin_p, W)
            y = jnp.dot(w_ref[...], rhs, preferred_element_type=jnp.float32)
            # BN (scale already in w) + bias/shift + ReLU; the mask re-zeroes
            # the gap columns so they remain a valid zero halo for the next layer.
            act = jnp.maximum(y + b_ref[...], 0.0) * mask
            # TODO(synk): nn.Dropout is stochastic in train mode; identity here (eval).

        # Head: avg_pool1d over T (1/T folded into fc_w) + Linear, two MXU matmuls.
        pooled = jnp.dot(act, pool_ref[...], preferred_element_type=jnp.float32)   # (H_pad, b_tile)
        out = jnp.dot(fc_w_ref[...], pooled,
                      preferred_element_type=jnp.float32) + fc_b_ref[...]          # (O_pad, b_tile)
        o_ref[0] = out

    return kernel


# -------------------------------- wrapper ------------------------------------

def tcn_forward(params, x_nct, eps=1e-5):
    """Eval-mode TCN forward: x_nct (B, C_in, T) -> (B, output_channels)."""
    x = x_nct.astype(jnp.float32)
    B, C_in, T = x.shape
    K = params["blocks"][0]["w"].shape[2]
    assert K % 2 == 1, "odd kernel_size required for length-preserving TCN blocks"

    # ---- batch tiling: b_tile elements per program, >= 2 programs when B >= 2 (v7x) ----
    b_tile = 1 if B < 2 else min(8, (B + 1) // 2)
    num_programs = -(-B // b_tile)
    B_pad = num_programs * b_tile

    # ---- static lane geometry: per-batch segment with built-in zero gaps (halo) ----
    dils = [int(blk["dilation"]) for blk in params["blocks"]]
    G = max(d * (K - 1) // 2 for d in dils)          # max per-layer halo
    S = T + 2 * G                                    # per-batch segment stride
    W = b_tile * S                                   # lanes per program

    SUB = 8                                          # f32 sublane multiple
    C_in_pad = _round_up(C_in, SUB)

    # ---- input: gapped, channel-padded, batch-stacked-on-lanes layout ----
    xr = jnp.zeros((B_pad, C_in, T), jnp.float32).at[:B].set(x)
    xr = xr.reshape(num_programs, b_tile, C_in, T)
    xg = jnp.zeros((num_programs, b_tile, C_in_pad, S), jnp.float32)
    xg = xg.at[:, :, :C_in, G:G + T].set(xr)
    xg = xg.transpose(0, 2, 1, 3).reshape(num_programs, C_in_pad, W)

    # real-column mask: 1.0 on the T real columns of each segment, 0.0 on gaps
    col = jnp.arange(S)
    seg_mask = ((col >= G) & (col < G + T)).astype(jnp.float32)     # (S,)
    mask = jnp.tile(seg_mask, (b_tile,)).reshape(1, W)

    # segment-sum ("pool") matrix; the 1/T of avg_pool1d is folded into fc_w
    eye_b = jnp.eye(b_tile, dtype=jnp.float32)
    pool = (seg_mask[None, :, None] * eye_b[:, None, :]).reshape(W, b_tile)

    flat_inputs = [xg, mask, pool]
    in_specs = [
        pl.BlockSpec((1, C_in_pad, W), lambda p: (p, 0, 0)),
        pl.BlockSpec((1, W), lambda p: (0, 0)),
        pl.BlockSpec((W, b_tile), lambda p: (0, 0)),
    ]

    # ---- per-layer weights: fold BN scale into conv weight, fuse K taps, pad channels ----
    layer_meta = []
    c_max_pad = C_in_pad
    cin, cin_pad = C_in, C_in_pad
    for blk in params["blocks"]:
        cout = blk["w"].shape[0]
        dil = int(blk["dilation"])
        cout_pad = _round_up(cout, SUB)
        c_max_pad = max(c_max_pad, cout_pad)

        s = blk["gamma"] / jnp.sqrt(blk["rv"] + eps)                 # BN scale
        shift = blk["beta"] + (blk["b"] - blk["rm"]) * s             # conv bias + BN shift
        w_eff = blk["w"] * s[:, None, None]                          # (cout, cin, K), scale folded
        wf = jnp.zeros((cout_pad, K, cin_pad), jnp.float32)
        wf = wf.at[:cout, :, :cin].set(jnp.transpose(w_eff, (0, 2, 1)))
        wf = wf.reshape(cout_pad, K * cin_pad)                       # column = k*cin_pad + i
        sh = jnp.zeros((cout_pad, 1), jnp.float32).at[:cout, 0].set(shift)

        layer_meta.append((cin_pad, cout_pad, dil))
        flat_inputs += [wf, sh]
        in_specs += [
            pl.BlockSpec((cout_pad, K * cin_pad), lambda p: (0, 0)),
            pl.BlockSpec((cout_pad, 1), lambda p: (0, 0)),
        ]
        cin, cin_pad = cout, cout_pad

    # ---- head: fold avg-pool 1/T into the FC weight, pad O/H to sublane multiples ----
    O, H = params["fc_w"].shape
    assert H == cin, "fc input dim must match last block's output channels"
    H_pad = cin_pad
    O_pad = _round_up(O, SUB)
    fc_w = jnp.zeros((O_pad, H_pad), jnp.float32).at[:O, :H].set(
        params["fc_w"].astype(jnp.float32) / float(T))
    fc_b = jnp.zeros((O_pad, 1), jnp.float32).at[:O, 0].set(
        params["fc_b"].astype(jnp.float32))
    flat_inputs += [fc_w, fc_b]
    in_specs += [pl.BlockSpec((O_pad, H_pad), lambda p: (0, 0)),
                 pl.BlockSpec((O_pad, 1), lambda p: (0, 0))]

    kern = _make_fused_tcn_kernel(tuple(layer_meta), K, G, W, c_max_pad)
    out = pl.pallas_call(
        kern,
        out_shape=jax.ShapeDtypeStruct((num_programs, O_pad, b_tile), jnp.float32),
        grid=(num_programs,),
        in_specs=in_specs,
        out_specs=pl.BlockSpec((1, O_pad, b_tile), lambda p: (p, 0, 0)),
        scratch_shapes=[pltpu.VMEM((c_max_pad, W + 2 * G), jnp.float32)],
        compiler_params=pltpu.CompilerParams(
            dimension_semantics=("parallel",)),                       # 2 TCs on v7x
    )(*flat_inputs)
    # (num_programs, O_pad, b_tile) -> (B, O).  Tiny (a few hundred bytes),
    # so the batch-major transpose/slice is done in plain XLA.
    # TODO(synk): for long sequences, add a T grid axis with a fused-receptive-
    # field halo per tile; not needed at these shapes (everything fits VMEM).
    out = out.transpose(0, 2, 1).reshape(B_pad, O_pad)
    return out[:B, :O]


# --------------------------- parameters (PyTorch init) -----------------------

def init_tcn_params(key, input_channels, output_channels,
                    list_of_dim_of_layers, hidden_size=64, kernel_size=3):
    dims = [input_channels] + list_of_dim_of_layers + [hidden_size]
    params = {"blocks": []}
    for i in range(len(dims) - 1):
        cin, cout = dims[i], dims[i + 1]
        key, k1, k2, k3, k4 = jax.random.split(key, 5)
        bound = 1.0 / float(jnp.sqrt(cin * kernel_size))
        params["blocks"].append(dict(
            w=jax.random.uniform(k1, (cout, cin, kernel_size), jnp.float32,
                                 -bound, bound),                    # PyTorch (Cout,Cin,K)
            b=jax.random.uniform(k2, (cout,), jnp.float32, -bound, bound),
            gamma=1.0 + 0.1 * jax.random.normal(k3, (cout,), jnp.float32),
            beta=0.1 * jax.random.normal(k4, (cout,), jnp.float32),
            rm=jnp.zeros((cout,), jnp.float32),                     # running_mean
            rv=jnp.ones((cout,), jnp.float32),                      # running_var
            dilation=2 ** i,
        ))
    key, k1, k2 = jax.random.split(key, 3)
    bound = 1.0 / float(jnp.sqrt(hidden_size))
    params["fc_w"] = jax.random.uniform(k1, (output_channels, hidden_size),
                                        jnp.float32, -bound, bound)
    params["fc_b"] = jax.random.uniform(k2, (output_channels,), jnp.float32,
                                        -bound, bound)
    return params


# ------------------------------ pure-JAX reference ---------------------------

def tcn_reference(params, x_nct, eps=1e-5):
    x = x_nct.astype(jnp.float32)
    for blk in params["blocks"]:
        d = int(blk["dilation"])
        K = blk["w"].shape[2]
        pad = d * (K - 1) // 2
        y = jax.lax.conv_general_dilated(
            x, blk["w"], window_strides=(1,), padding=[(pad, pad)],
            rhs_dilation=(d,), dimension_numbers=("NCH", "OIH", "NCH"))
        y = y + blk["b"][None, :, None]
        y = (y - blk["rm"][None, :, None]) / jnp.sqrt(
            blk["rv"][None, :, None] + eps)
        y = y * blk["gamma"][None, :, None] + blk["beta"][None, :, None]
        x = jnp.maximum(y, 0.0)
    m = jnp.mean(x, axis=-1)
    return m @ params["fc_w"].T + params["fc_b"]


# ----------------------------------- main ------------------------------------

if __name__ == "__main__":
    key = jax.random.PRNGKey(0)
    kp, kx = jax.random.split(key)

    B, C_in, T = 2, 4, 16
    output_channels = 5
    params = init_tcn_params(kp, C_in, output_channels,
                             list_of_dim_of_layers=[8, 16],
                             hidden_size=32, kernel_size=3)
    x = jax.random.normal(kx, (B, C_in, T), jnp.float32)

    out = jax.block_until_ready(tcn_forward(params, x))
    ref = tcn_reference(params, x)

    assert out.shape == (B, output_channels), out.shape
    assert jnp.allclose(out, ref, rtol=1e-4, atol=1e-4), (out, ref)
    print("KERNEL_OK")
</pallas_src>

<mosaic_0001>
module attributes {stable_mosaic.version = 11 : i64} {
  func.func @kernel(%arg0: i32, %arg1: memref<1x8x24xf32, #tpu.memory_space<vmem>>, %arg2: memref<1x24xf32, #tpu.memory_space<vmem>>, %arg3: memref<24x1xf32, #tpu.memory_space<vmem>>, %arg4: memref<8x24xf32, #tpu.memory_space<vmem>>, %arg5: memref<8x1xf32, #tpu.memory_space<vmem>>, %arg6: memref<16x24xf32, #tpu.memory_space<vmem>>, %arg7: memref<16x1xf32, #tpu.memory_space<vmem>>, %arg8: memref<32x48xf32, #tpu.memory_space<vmem>>, %arg9: memref<32x1xf32, #tpu.memory_space<vmem>>, %arg10: memref<8x32xf32, #tpu.memory_space<vmem>>, %arg11: memref<8x1xf32, #tpu.memory_space<vmem>>, %arg12: memref<1x8x1xf32, #tpu.memory_space<vmem>>, %arg13: memref<32x32xf32, #tpu.memory_space<vmem>>) attributes {dimension_semantics = [#tpu.dimension_semantics<parallel>], iteration_bounds = array<i64: 2>, scalar_prefetch = 0 : i64, scratch_operands = 1 : i64, tpu.core_type = #tpu.core_type<tc>, window_params = [{transform_indices = @transform_0, window_bounds = array<i64: 1, 8, 24>}, {pipeline_mode = #tpu.pipeline_mode<synchronous>, transform_indices = @transform_1, window_bounds = array<i64: 1, 24>}, {pipeline_mode = #tpu.pipeline_mode<synchronous>, transform_indices = @transform_2, window_bounds = array<i64: 24, 1>}, {pipeline_mode = #tpu.pipeline_mode<synchronous>, transform_indices = @transform_3, window_bounds = array<i64: 8, 24>}, {pipeline_mode = #tpu.pipeline_mode<synchronous>, transform_indices = @transform_4, window_bounds = array<i64: 8, 1>}, {pipeline_mode = #tpu.pipeline_mode<synchronous>, transform_indices = @transform_5, window_bounds = array<i64: 16, 24>}, {pipeline_mode = #tpu.pipeline_mode<synchronous>, transform_indices = @transform_6, window_bounds = array<i64: 16, 1>}, {pipeline_mode = #tpu.pipeline_mode<synchronous>, transform_indices = @transform_7, window_bounds = array<i64: 32, 48>}, {pipeline_mode = #tpu.pipeline_mode<synchronous>, transform_indices = @transform_8, window_bounds = array<i64: 32, 1>}, {pipeline_mode = #tpu.pipeline_mode<synchronous>, transform_indices = @transform_9, window_bounds = array<i64: 8, 32>}, {pipeline_mode = #tpu.pipeline_mode<synchronous>, transform_indices = @transform_10, window_bounds = array<i64: 8, 1>}, {transform_indices = @transform_11, window_bounds = array<i64: 1, 8, 1>}]} {
    %cst = arith.constant 0.000000e+00 : f32
    %0 = vector.broadcast %cst : f32 to vector<32x4xf32>
    %c0 = arith.constant 0 : index
    %c0_0 = arith.constant 0 : index
    %1 = vector.load %arg13[%c0, %c0_0] : memref<32x32xf32, #tpu.memory_space<vmem>>, vector<32x4xf32>
    tpu.vector_store %arg13[%c0, %c0_0], %0 {strides = array<i32>} : memref<32x32xf32, #tpu.memory_space<vmem>>, vector<32x4xf32>,
    %cst_1 = arith.constant 0.000000e+00 : f32
    %2 = vector.broadcast %cst_1 : f32 to vector<32x4xf32>
    %c0_2 = arith.constant 0 : index
    %c28 = arith.constant 28 : index
    %3 = vector.load %arg13[%c0_2, %c28] : memref<32x32xf32, #tpu.memory_space<vmem>>, vector<32x4xf32>
    tpu.vector_store %arg13[%c0_2, %c28], %2 {strides = array<i32>} : memref<32x32xf32, #tpu.memory_space<vmem>>, vector<32x4xf32>,
    %c0_3 = arith.constant 0 : index
    %c0_4 = arith.constant 0 : index
    %4 = vector.load %arg2[%c0_3, %c0_4] : memref<1x24xf32, #tpu.memory_space<vmem>>, vector<1x24xf32>
    %c0_5 = arith.constant 0 : index
    %c0_6 = arith.constant 0 : index
    %c0_7 = arith.constant 0 : index
    %5 = vector.load %arg1[%c0_5, %c0_6, %c0_7] : memref<1x8x24xf32, #tpu.memory_space<vmem>>, vector<1x8x24xf32>
    %6 = vector.shape_cast %5 : vector<1x8x24xf32> to vector<8x24xf32>
    %c0_8 = arith.constant 0 : index
    %c4 = arith.constant 4 : index
    %7 = vector.load %arg13[%c0_8, %c4] : memref<32x32xf32, #tpu.memory_space<vmem>>, vector<8x24xf32>
    tpu.vector_store %arg13[%c0_8, %c4], %6 {strides = array<i32>} : memref<32x32xf32, #tpu.memory_space<vmem>>, vector<8x24xf32>,
    %c0_9 = arith.constant 0 : index
    %c3 = arith.constant 3 : index
    %8 = vector.load %arg13[%c0_9, %c3] : memref<32x32xf32, #tpu.memory_space<vmem>>, vector<8x24xf32>
    %c0_10 = arith.constant 0 : index
    %c4_11 = arith.constant 4 : index
    %9 = vector.load %arg13[%c0_10, %c4_11] : memref<32x32xf32, #tpu.memory_space<vmem>>, vector<8x24xf32>
    %c0_12 = arith.constant 0 : index
    %c5 = arith.constant 5 : index
    %10 = vector.load %arg13[%c0_12, %c5] : memref<32x32xf32, #tpu.memory_space<vmem>>, vector<8x24xf32>
    %11 = tpu.concatenate %8, %9, %10 in 0 : vector<8x24xf32>, vector<8x24xf32>, vector<8x24xf32> -> vector<24x24xf32>
    %c0_13 = arith.constant 0 : index
    %c0_14 = arith.constant 0 : index
    %12 = vector.load %arg4[%c0_13, %c0_14] : memref<8x24xf32, #tpu.memory_space<vmem>>, vector<8x24xf32>
    %cst_15 = arith.constant dense<0.000000e+00> : vector<8x24xf32>
    %13 = tpu.matmul %12, %11, %cst_15 {dimension_numbers = #tpu.dot_dimension_numbers<[1], [0], [0], [1], [0, 0, 1, 1], [], []>} : vector<8x24xf32>, vector<24x24xf32>, vector<8x24xf32> -> vector<8x24xf32>
    %c0_16 = arith.constant 0 : index
    %c0_17 = arith.constant 0 : index
    %14 = vector.load %arg5[%c0_16, %c0_17] : memref<8x1xf32, #tpu.memory_space<vmem>>, vector<8x1xf32>
    %15 = vector.broadcast %14 : vector<8x1xf32> to vector<8x24xf32>
    %16 = arith.addf %13, %15 : vector<8x24xf32>
    %cst_18 = arith.constant 0.000000e+00 : f32
    %17 = vector.broadcast %cst_18 : f32 to vector<8x24xf32>
    %18 = arith.maximumf %16, %17 : vector<8x24xf32>
    %19 = vector.broadcast %4 : vector<1x24xf32> to vector<8x24xf32>
    %20 = arith.mulf %18, %19 : vector<8x24xf32>
    %c0_19 = arith.constant 0 : index
    %c4_20 = arith.constant 4 : index
    %21 = vector.load %arg13[%c0_19, %c4_20] : memref<32x32xf32, #tpu.memory_space<vmem>>, vector<8x24xf32>
    tpu.vector_store %arg13[%c0_19, %c4_20], %20 {strides = array<i32>} : memref<32x32xf32, #tpu.memory_space<vmem>>, vector<8x24xf32>,
    %c0_21 = arith.constant 0 : index
    %c2 = arith.constant 2 : index
    %22 = vector.load %arg13[%c0_21, %c2] : memref<32x32xf32, #tpu.memory_space<vmem>>, vector<8x24xf32>
    %c0_22 = arith.constant 0 : index
    %c4_23 = arith.constant 4 : index
    %23 = vector.load %arg13[%c0_22, %c4_23] : memref<32x32xf32, #tpu.memory_space<vmem>>, vector<8x24xf32>
    %c0_24 = arith.constant 0 : index
    %c6 = arith.constant 6 : index
    %24 = vector.load %arg13[%c0_24, %c6] : memref<32x32xf32, #tpu.memory_space<vmem>>, vector<8x24xf32>
    %25 = tpu.concatenate %22, %23, %24 in 0 : vector<8x24xf32>, vector<8x24xf32>, vector<8x24xf32> -> vector<24x24xf32>
    %c0_25 = arith.constant 0 : index
    %c0_26 = arith.constant 0 : index
    %26 = vector.load %arg6[%c0_25, %c0_26] : memref<16x24xf32, #tpu.memory_space<vmem>>, vector<16x24xf32>
    %cst_27 = arith.constant dense<0.000000e+00> : vector<16x24xf32>
    %27 = tpu.matmul %26, %25, %cst_27 {dimension_numbers = #tpu.dot_dimension_numbers<[1], [0], [0], [1], [0, 0, 1, 1], [], []>} : vector<16x24xf32>, vector<24x24xf32>, vector<16x24xf32> -> vector<16x24xf32>
    %c0_28 = arith.constant 0 : index
    %c0_29 = arith.constant 0 : index
    %28 = vector.load %arg7[%c0_28, %c0_29] : memref<16x1xf32, #tpu.memory_space<vmem>>, vector<16x1xf32>
    %29 = vector.broadcast %28 : vector<16x1xf32> to vector<16x24xf32>
    %30 = arith.addf %27, %29 : vector<16x24xf32>
    %cst_30 = arith.constant 0.000000e+00 : f32
    %31 = vector.broadcast %cst_30 : f32 to vector<16x24xf32>
    %32 = arith.maximumf %30, %31 : vector<16x24xf32>
    %33 = vector.broadcast %4 : vector<1x24xf32> to vector<16x24xf32>
    %34 = arith.mulf %32, %33 : vector<16x24xf32>
    %c0_31 = arith.constant 0 : index
    %c4_32 = arith.constant 4 : index
    %35 = vector.load %arg13[%c0_31, %c4_32] : memref<32x32xf32, #tpu.memory_space<vmem>>, vector<16x24xf32>
    tpu.vector_store %arg13[%c0_31, %c4_32], %34 {strides = array<i32>} : memref<32x32xf32, #tpu.memory_space<vmem>>, vector<16x24xf32>,
    %c0_33 = arith.constant 0 : index
    %c0_34 = arith.constant 0 : index
    %36 = vector.load %arg13[%c0_33, %c0_34] : memref<32x32xf32, #tpu.memory_space<vmem>>, vector<16x24xf32>
    %c0_35 = arith.constant 0 : index
    %c4_36 = arith.constant 4 : index
    %37 = vector.load %arg13[%c0_35, %c4_36] : memref<32x32xf32, #tpu.memory_space<vmem>>, vector<16x24xf32>
    %c0_37 = arith.constant 0 : index
    %c8 = arith.constant 8 : index
    %38 = vector.load %arg13[%c0_37, %c8] : memref<32x32xf32, #tpu.memory_space<vmem>>, vector<16x24xf32>
    %39 = tpu.concatenate %36, %37, %38 in 0 : vector<16x24xf32>, vector<16x24xf32>, vector<16x24xf32> -> vector<48x24xf32>
    %c0_38 = arith.constant 0 : index
    %c0_39 = arith.constant 0 : index
    %40 = vector.load %arg8[%c0_38, %c0_39] : memref<32x48xf32, #tpu.memory_space<vmem>>, vector<32x48xf32>
    %cst_40 = arith.constant dense<0.000000e+00> : vector<32x24xf32>
    %41 = tpu.matmul %40, %39, %cst_40 {dimension_numbers = #tpu.dot_dimension_numbers<[1], [0], [0], [1], [0, 0, 1, 1], [], []>} : vector<32x48xf32>, vector<48x24xf32>, vector<32x24xf32> -> vector<32x24xf32>
    %c0_41 = arith.constant 0 : index
    %c0_42 = arith.constant 0 : index
    %42 = vector.load %arg9[%c0_41, %c0_42] : memref<32x1xf32, #tpu.memory_space<vmem>>, vector<32x1xf32>
    %43 = vector.broadcast %42 : vector<32x1xf32> to vector<32x24xf32>
    %44 = arith.addf %41, %43 : vector<32x24xf32>
    %cst_43 = arith.constant 0.000000e+00 : f32
    %45 = vector.broadcast %cst_43 : f32 to vector<32x24xf32>
    %46 = arith.maximumf %44, %45 : vector<32x24xf32>
    %47 = vector.broadcast %4 : vector<1x24xf32> to vector<32x24xf32>
    %48 = arith.mulf %46, %47 : vector<32x24xf32>
    %c0_44 = arith.constant 0 : index
    %c0_45 = arith.constant 0 : index
    %49 = vector.load %arg3[%c0_44, %c0_45] : memref<24x1xf32, #tpu.memory_space<vmem>>, vector<24x1xf32>
    %cst_46 = arith.constant dense<0.000000e+00> : vector<32x1xf32>
    %50 = tpu.matmul %48, %49, %cst_46 {dimension_numbers = #tpu.dot_dimension_numbers<[1], [0], [0], [1], [0, 0, 1, 1], [], []>} : vector<32x24xf32>, vector<24x1xf32>, vector<32x1xf32> -> vector<32x1xf32>
    %c0_47 = arith.constant 0 : index
    %c0_48 = arith.constant 0 : index
    %51 = vector.load %arg10[%c0_47, %c0_48] : memref<8x32xf32, #tpu.memory_space<vmem>>, vector<8x32xf32>
    %cst_49 = arith.constant dense<0.000000e+00> : vector<8x1xf32>
    %52 = tpu.matmul %51, %50, %cst_49 {dimension_numbers = #tpu.dot_dimension_numbers<[1], [0], [0], [1], [0, 0, 1, 1], [], []>} : vector<8x32xf32>, vector<32x1xf32>, vector<8x1xf32> -> vector<8x1xf32>
    %c0_50 = arith.constant 0 : index
    %c0_51 = arith.constant 0 : index
    %53 = vector.load %arg11[%c0_50, %c0_51] : memref<8x1xf32, #tpu.memory_space<vmem>>, vector<8x1xf32>
    %54 = arith.addf %52, %53 : vector<8x1xf32>
    %c0_52 = arith.constant 0 : index
    %c0_53 = arith.constant 0 : index
    %c0_54 = arith.constant 0 : index
    %55 = vector.load %arg12[%c0_52, %c0_53, %c0_54] : memref<1x8x1xf32, #tpu.memory_space<vmem>>, vector<1x8x1xf32>
    %56 = vector.shape_cast %55 : vector<1x8x1xf32> to vector<8x1xf32>
    %57 = vector.shape_cast %54 : vector<8x1xf32> to vector<1x8x1xf32>
    tpu.vector_store %arg12[%c0_52, %c0_53, %c0_54], %57 {strides = array<i32>} : memref<1x8x1xf32, #tpu.memory_space<vmem>>, vector<1x8x1xf32>,
    return
  }
  func.func @transform_0(%arg0: i32) -> (i32, i32, i32) {
    %c0_i32 = arith.constant 0 : i32
    %c0_i32_0 = arith.constant 0 : i32
    %c0_i32_1 = arith.constant 0 : i32
    return %arg0, %c0_i32, %c0_i32_0 : i32, i32, i32
  }
  func.func @transform_1(%arg0: i32) -> (i32, i32) {
    %c0_i32 = arith.constant 0 : i32
    %c0_i32_0 = arith.constant 0 : i32
    %c0_i32_1 = arith.constant 0 : i32
    return %c0_i32, %c0_i32_0 : i32, i32
  }
  func.func @transform_2(%arg0: i32) -> (i32, i32) {
    %c0_i32 = arith.constant 0 : i32
    %c0_i32_0 = arith.constant 0 : i32
    %c0_i32_1 = arith.constant 0 : i32
    return %c0_i32, %c0_i32_0 : i32, i32
  }
  func.func @transform_3(%arg0: i32) -> (i32, i32) {
    %c0_i32 = arith.constant 0 : i32
    %c0_i32_0 = arith.constant 0 : i32
    %c0_i32_1 = arith.constant 0 : i32
    return %c0_i32, %c0_i32_0 : i32, i32
  }
  func.func @transform_4(%arg0: i32) -> (i32, i32) {
    %c0_i32 = arith.constant 0 : i32
    %c0_i32_0 = arith.constant 0 : i32
    %c0_i32_1 = arith.constant 0 : i32
    return %c0_i32, %c0_i32_0 : i32, i32
  }
  func.func @transform_5(%arg0: i32) -> (i32, i32) {
    %c0_i32 = arith.constant 0 : i32
    %c0_i32_0 = arith.constant 0 : i32
    %c0_i32_1 = arith.constant 0 : i32
    return %c0_i32, %c0_i32_0 : i32, i32
  }
  func.func @transform_6(%arg0: i32) -> (i32, i32) {
    %c0_i32 = arith.constant 0 : i32
    %c0_i32_0 = arith.constant 0 : i32
    %c0_i32_1 = arith.constant 0 : i32
    return %c0_i32, %c0_i32_0 : i32, i32
  }
  func.func @transform_7(%arg0: i32) -> (i32, i32) {
    %c0_i32 = arith.constant 0 : i32
    %c0_i32_0 = arith.constant 0 : i32
    %c0_i32_1 = arith.constant 0 : i32
    return %c0_i32, %c0_i32_0 : i32, i32
  }
  func.func @transform_8(%arg0: i32) -> (i32, i32) {
    %c0_i32 = arith.constant 0 : i32
    %c0_i32_0 = arith.constant 0 : i32
    %c0_i32_1 = arith.constant 0 : i32
    return %c0_i32, %c0_i32_0 : i32, i32
  }
  func.func @transform_9(%arg0: i32) -> (i32, i32) {
    %c0_i32 = arith.constant 0 : i32
    %c0_i32_0 = arith.constant 0 : i32
    %c0_i32_1 = arith.constant 0 : i32
    return %c0_i32, %c0_i32_0 : i32, i32
  }
  func.func @transform_10(%arg0: i32) -> (i32, i32) {
    %c0_i32 = arith.constant 0 : i32
    %c0_i32_0 = arith.constant 0 : i32
    %c0_i32_1 = arith.constant 0 : i32
    return %c0_i32, %c0_i32_0 : i32, i32
  }
  func.func @transform_11(%arg0: i32) -> (i32, i32, i32) {
    %c0_i32 = arith.constant 0 : i32
    %c0_i32_0 = arith.constant 0 : i32
    %c0_i32_1 = arith.constant 0 : i32
    return %arg0, %c0_i32, %c0_i32_0 : i32, i32, i32
  }
}

</mosaic_0001>

<bundles_post_ra>
// kernel: tpu_custom_call.1
= control target key start
LH: loop header
LB: loop body
LE: loop exit
PB: predicated region body
PF: predicated region fallthrough
CT: control target
= control target key end

     0   :  { %s1220_s17 = smov 0   ;;  %s1354_s0 = inlined_call_operand.vmem [shape: f32[2,8,24], index: 0, kind: input, shape index: {}]   ;;  %s1355_s1 = inlined_call_operand.vmem [shape: f32[1,24], index: 1, kind: input, shape index: {}]   ;;  %s1356_s2 = inlined_call_operand.vmem [shape: f32[24,1], index: 2, kind: input, shape index: {}]   ;;  %s1357_s3 = inlined_call_operand.vmem [shape: f32[8,24], index: 3, kind: input, shape index: {}]   ;;  %s1358_s4 = inlined_call_operand.vmem [shape: f32[8,1], index: 4, kind: input, shape index: {}]   ;;  %s1359_s5 = inlined_call_operand.vmem [shape: f32[16,24], index: 5, kind: input, shape index: {}]   ;;  %s1360_s6 = inlined_call_operand.vmem [shape: f32[16,1], index: 6, kind: input, shape index: {}]   ;;  %s1361_s7 = inlined_call_operand.vmem [shape: f32[32,48], index: 7, kind: input, shape index: {}]   ;;  %s1362_s8 = inlined_call_operand.vmem [shape: f32[32,1], index: 8, kind: input, shape index: {}]   ;;  %s1363_s9 = inlined_call_operand.vmem [shape: f32[8,32], index: 9, kind: input, shape index: {}]   ;;  %s1364_s10 = inlined_call_operand.vmem [shape: f32[8,1], index: 10, kind: input, shape index: {}]   ;;  %s1365_s11 = inlined_call_operand.vmem [shape: f32[2,8,1], index: 11, kind: output, shape index: {}]  }
   0x1 LB: > { %s1012_s18 = sadd.s32 4294967295, %s1149_s17   ;;  %p1016_p0 = scmp.ge.s32.totalorder %s1149_s17, 1  ;;  %s1149_s17 = sphi %s1220_s17, %s21_s17  }
   0x2   : > { %p336_p1 = scmp.lt.s32.totalorder %s1149_s17, 3 }
   0x4   : > { %p337_p2 = pnand %p1016_p0, %p336_p1 }
   0x5   : > { %p374_p3 = scmp.lt.s32.totalorder (!%p337_p2), %s1012_s18, 1  ;;  %s1152_s23 = smov (!%p337_p2), 4  }
   0x6   : > { %340 = sbr.rel (%p337_p2) target bundleno = 1982 (0x7be), region = 64  ;;  %s1153_s24 = smov (!%p337_p2), 127  }
   0x7   : > { %s1154_s25 = smov (!%p337_p2), 126   ;;  %s1157_s26 = smov (!%p337_p2), 125  }
   0x8   : > { %s1158_s14 = smov (!%p337_p2), 124   ;;  %s1159_s29 = smov (!%p337_p2), 120  }
   0xb   : > { %vm382_vm0 = vcmask 31744   ;;  %vm387_vm1 = vcmask 261344   ;;  %v1151_v0 = vmov 0.0   ;;  %s1367_s18 = smov (!%p374_p3, %s1012_s18), 1  ;;  %vm398_vm2 = vcmask 228384   ;;  %v407_v7 = vld [vmem:[%s1358_s4] sm:$0xff] }
   0xc   : > { %383 = vst.msk [vmem:[#allocation2] sm:$0xff] %vm382_vm0, %v1151_v0  ;;  %384 = vst.msk [vmem:[#allocation2 + $0x8] sm:$0xff] %vm382_vm0, %v1151_v0  ;;  %1065 = vmatprep.subr.mxu0 %v1151_v0  ;;  %s1017_s19 = sshll.u32 %s1367_s18, 3  ;;  %vm1155_vm3 = vmmov 0   ;;  %v1156_v4 = vmov 0   ;;  %v406_v10 = vld [vmem:[%s1357_s3] sm:$0xff] }
   0xd   : > { %388 = vst.msk [vmem:[#allocation2] sm:$0xff] %vm387_vm1, %v1151_v0  ;;  %389 = vst.msk [vmem:[#allocation2 + $0x8] sm:$0xff] %vm387_vm1, %v1151_v0  ;;  %s377_s22 = scalar_lea.vmem %s1354_s0, %s1017_s19  ;;  %1071 = vmatprep.mubr.msk.f32.mxu0 %vm1155_vm3, %v1151_v0  ;;  %1141 = vset.pattern.permute.xlu0 %v1156_v4  ;;  %vm422_vm4 = vcmask 195584   ;;  %v1258_v15 = vld [vmem:[%s1355_s1] ss:$0 sm:$0xff]  ;;  %v518_v25 = vld [vmem:[%s1360_s6 + $0x8] sm:$0xff] }
   0xe   : > { %v393_v1 = vld [vmem:[%s377_s22] sm:$0xff]  ;;  %1142 = vset.pattern.permute.xlu1 %v1156_v4  ;;  %v516_v28 = vld [vmem:[%s1359_s5 + $0x8] sm:$0xff]  ;;  %vm675_vm5 = vcmask 392192   ;;  %v653_v46 = vld [vmem:[%s1362_s8 + $0x10] sm:$0xff]  ;;  %vm883_vm6 = vcmask 261120   ;;  %vm957_vm7 = vcmask 7168  }
   0xf   : > { %395 = vrot.lane.b32.xlu0 %v393_v1, %s1152_s23  ;;  %v515_v21 = vld [vmem:[%s1359_s5] sm:$0xff]  ;;  %v652_v45 = vld [vmem:[%s1362_s8 + $0x8] sm:$0xff]  ;;  %v654_v47 = vld [vmem:[%s1362_s8 + $0x18] sm:$0xff] }
  0x10   : > { %1080 = vmatprep.mubr.msk.f32.mxu1 %vm422_vm4, %v515_v21  ;;  %v517_v24 = vld [vmem:[%s1360_s6] sm:$0xff]  ;;  %v648_v52 = vld [vmem:[%s1361_s7 + $0x8] sm:$0xff]  ;;  %v649_v53 = vld [vmem:[%s1361_s7 + $0x10] sm:$0xff] }
  0x11   : > { %v647_v41 = vld [vmem:[%s1361_s7] sm:$0xff]  ;;  %v650_v54 = vld [vmem:[%s1361_s7 + $0x18] sm:$0xff]  ;;  %v783_v55 = vld [vmem:[%s1356_s2 + $0x10] sm:$0xff] }
  0x12   : > { %v651_v44 = vld [vmem:[%s1362_s8] sm:$0xff]  ;;  %v782_v56 = vld [vmem:[%s1356_s2 + $0x8] sm:$0xff] }
  0x13   : > { %v781_v57 = vld [vmem:[%s1356_s2] sm:$0xff] }
  0x81   : > { %v396_v2 = vpop.permute.xlu0 %395 }
  0x82   : > { %399 = vst.msk [vmem:[#allocation2] sm:$0xff] %vm398_vm2, %v396_v2 }
  0x89   : > { %v400_v3 = vld [vmem:[#allocation2] sm:$0xff] }
  0x8a   : > { %402 = vrot.lane.b32.xlu1 %v400_v3, %s1153_s24  ;;  %404 = vrot.lane.b32.xlu0 %v400_v3, %s1154_s25  ;;  %s381_s24 = scalar_lea.vmem %s1365_s11, %s1017_s19 }
  0xfc   : > { %v403_v5 = vpop.permute.xlu1 %402  ;;  %v405_v6 = vpop.permute.xlu0 %404 }
  0xfd   : > { %415 = vrot.lane.b32.xlu0 %v403_v5, %s1157_s26  ;;  %417 = vrot.lane.b32.xlu1 %v405_v6, %s1157_s26 }
 0x101   : > { %413 = vrot.lane.b32.xlu1 %v400_v3, %s1157_s26  ;;  %410 = vperm.xlu0 %1141, %v407_v7  }
 0x16f   : > { %v418_v8 = vpop.permute.xlu1 %417  ;;  %v416_v9 = vpop.permute.xlu0 %415 }
 0x170   : > { %1066 = vmatpush3.msra.mxu0 %v418_v8 }
 0x171   : > { %1067 = vmatprep.subr.mxu0 %v1151_v0 }
 0x172   : > { %1068 = vmatpush3.msra.mxu0 %v416_v9 }
 0x173   : > { %1069 = vmatprep.subr.mxu0 %v1151_v0  ;;  %v414_v11 = vpop.permute.xlu1 %413 }
 0x174   : > { %1070 = vmatpush3.msra.mxu0 %v414_v11 }
 0x175   : > { %1072 = vmatmul.mubr.msk.f32.vlgmr.msra.gmra.mxu0 %vm422_vm4, %v406_v10 }
 0x176   : > { %1095 = vmatprep.mubr.msk.f32.mxu0 %vm675_vm5, %v647_v41 }
 0x17c   : > { %v411_v12 = vpop.permute.xlu0 %410 }
 0x235   : > { %v492_v13 = vpop.f32.mrf.mxu0 }
 0x236   : > { %v493_v14 = vadd.f32 %v492_v13, %v411_v12 }
 0x237   : > { %v1073_v16 = vpop.f32.mrf.mxu0 }
 0x238   : > { %v496_v17 = vmax.f32 %v493_v14, 0.0 }
 0x23a   : > { %v503_v18 = vmul.f32 %v1258_v15, %v496_v17 }
 0x23c   : > { %505 = vrot.lane.b32.xlu1 %v503_v18, %s1152_s23 }
 0x2ae   : > { %v506_v19 = vpop.permute.xlu1 %505 }
 0x2af   : > { %508 = vst.msk [vmem:[#allocation2] sm:$0xff] %vm398_vm2, %v506_v19 }
 0x2b6   : > { %v509_v20 = vld [vmem:[#allocation2] sm:$0xff] }
 0x2b7   : > { %511 = vrot.lane.b32.xlu0 %v509_v20, %s1154_s25  ;;  %513 = vrot.lane.b32.xlu1 %v509_v20, %s1158_s14  ;;  %v882_v20 = vld [vmem:[%s1364_s10] sm:$0xff] }
 0x329   : > { %v512_v22 = vpop.permute.xlu0 %511  ;;  %v514_v23 = vpop.permute.xlu1 %513 }
 0x32a   : > { %529 = vrot.lane.b32.xlu0 %v512_v22, %s1154_s25  ;;  %531 = vrot.lane.b32.xlu1 %v514_v23, %s1154_s25 }
 0x32e   : > { %521 = vperm.xlu0 %1141, %v517_v24   ;;  %526 = vperm.xlu1 %1142, %v518_v25  }
 0x39c   : > { %v532_v26 = vpop.permute.xlu1 %531  ;;  %v530_v27 = vpop.permute.xlu0 %529 }
 0x39d   : > { %1074 = vmatprep.subr.mxu1 %v532_v26 }
 0x39e   : > { %1075 = vmatpush3.msra.mxu1 %v532_v26 }
 0x39f   : > { %1076 = vmatprep.subr.mxu1 %v530_v27 }
 0x3a0   : > { %1077 = vmatpush3.msra.mxu1 %v530_v27 }
 0x3a1   : > { %1078 = vmatprep.subr.mxu1 %v512_v22 }
 0x3a2   : > { %1079 = vmatpush3.msra.mxu1 %v512_v22 }
 0x3a3   : > { %1081 = vmatmul.mubr.msk.f32.vlgmr.msra.gmra.mxu1 %vm422_vm4, %v516_v28  ;;  %1101 = vmatprep.subr.mxu1 %v783_v55 }
 0x3a4   : > { %1102 = vmatpush3.msra.mxu1 %v783_v55 }
 0x3a5   : > { %1103 = vmatprep.subr.mxu1 %v782_v56 }
 0x3a6   : > { %1104 = vmatpush3.msra.mxu1 %v782_v56 }
 0x3a7   : > { %1105 = vmatprep.subr.mxu1 %v781_v57 }
 0x3a8   : > { %1106 = vmatpush3.msra.mxu1 %v781_v57 }
 0x3a9   : > { %v527_v29 = vpop.permute.xlu1 %526  ;;  %v522_v32 = vpop.permute.xlu0 %521  ;;  %1113 = vmatprep.subr.mxu1 %v1151_v0 }
 0x463   : > { %v1082_v30 = vpop.f32.mrf.mxu1 }
 0x464   : > { %v614_v31 = vadd.f32 %v1082_v30, %v527_v29 }
 0x465   : > { %v608_v33 = vpop.f32.mrf.mxu1 }
 0x466   : > { %v618_v34 = vmax.f32 %v614_v31, 0.0  ;;  %v609_v35 = vadd.f32 %v608_v33, %v522_v32 }
 0x468   : > { %v620_v36 = vmul.f32 %v1258_v15, %v618_v34  ;;  %v617_v37 = vmax.f32 %v609_v35, 0.0 }
 0x46a   : > { %v619_v38 = vmul.f32 %v1258_v15, %v617_v37  ;;  %625 = vrot.lane.b32.xlu1 %v620_v36, %s1152_s23 }
 0x46c   : > { %623 = vrot.lane.b32.xlu0 %v619_v38, %s1152_s23 }
 0x4dc   : > { %v626_v39 = vpop.permute.xlu1 %625 }
 0x4dd   : > { %630 = vst.msk [vmem:[#allocation2 + $0x8] sm:$0xff] %vm398_vm2, %v626_v39 }
 0x4de   : > { %v624_v40 = vpop.permute.xlu0 %623 }
 0x4df   : > { %629 = vst.msk [vmem:[#allocation2] sm:$0xff] %vm398_vm2, %v624_v40 }
 0x4e4   : > { %v632_v42 = vld [vmem:[#allocation2 + $0x8] sm:$0xff] }
 0x4e5   : > { %643 = vrot.lane.b32.xlu1 %v632_v42, %s1159_s29 }
 0x4e6   : > { %v631_v43 = vld [vmem:[#allocation2] sm:$0xff] }
 0x4e7   : > { %641 = vrot.lane.b32.xlu0 %v631_v43, %s1159_s29 }
 0x4e9   : > { %637 = vrot.lane.b32.xlu1 %v632_v42, %s1158_s14 }
 0x4eb   : > { %635 = vrot.lane.b32.xlu0 %v631_v43, %s1158_s14 }
 0x4ed   : > { %657 = vperm.xlu1 %1142, %v651_v44  }
 0x4ef   : > { %662 = vperm.xlu0 %1141, %v652_v45  }
 0x4f1   : > { %667 = vperm.xlu1 %1142, %v653_v46  }
 0x4f3   : > { %672 = vperm.xlu0 %1141, %v654_v47  }
 0x557   : > { %v644_v48 = vpop.permute.xlu1 %643 }
 0x558   : > { %1083 = vmatprep.subr.mxu0 %v644_v48 }
 0x559   : > { %v642_v49 = vpop.permute.xlu0 %641  ;;  %1084 = vmatpush3.msra.mxu0 %v644_v48 }
 0x55a   : > { %1085 = vmatprep.subr.mxu0 %v642_v49 }
 0x55b   : > { %1086 = vmatpush3.msra.mxu0 %v642_v49  ;;  %v638_v50 = vpop.permute.xlu1 %637 }
 0x55c   : > { %1087 = vmatprep.subr.mxu0 %v638_v50 }
 0x55d   : > { %v636_v51 = vpop.permute.xlu0 %635  ;;  %1088 = vmatpush3.msra.mxu0 %v638_v50 }
 0x55e   : > { %1089 = vmatprep.subr.mxu0 %v636_v51 }
 0x55f   : > { %1090 = vmatpush3.msra.mxu0 %v636_v51 }
 0x560   : > { %1091 = vmatprep.subr.mxu0 %v632_v42 }
 0x561   : > { %1092 = vmatpush3.msra.mxu0 %v632_v42 }
 0x562   : > { %1093 = vmatprep.subr.mxu0 %v631_v43 }
 0x563   : > { %1094 = vmatpush3.msra.mxu0 %v631_v43 }
 0x564   : > { %1096 = vmatmul.mubr.msk.f32.vlgmr.msra.gmra.mxu0 %vm675_vm5, %v648_v52 }
 0x565   : > { %1098 = vmatprep.mubr.msk.f32.mxu0 %vm675_vm5, %v649_v53 }
 0x568   : > { %1099 = vmatmul.mubr.msk.f32.gmra.mxu0 %vm675_vm5, %v650_v54  ;;  %v658_v59 = vpop.permute.xlu1 %657 }
 0x56a   : > { %v663_v58 = vpop.permute.xlu0 %662 }
 0x56c   : > { %v668_v6 = vpop.permute.xlu1 %667 }
 0x56e   : > { %v673_v1 = vpop.permute.xlu0 %672 }
 0x624   : > { %v1097_v60 = vpop.f32.mrf.mxu0 }
 0x625   : > { %v760_v61 = vadd.f32 %v1097_v60, %v663_v58 }
 0x626   : > { %v754_v62 = vpop.f32.mrf.mxu0 }
 0x627   : > { %v755_v63 = vadd.f32 %v754_v62, %v658_v59  ;;  %v774_v2 = vmax.f32 %v760_v61, 0.0 }
 0x628   : > { %v1100_v3 = vpop.f32.mrf.mxu0 }
 0x629   : > { %v773_v4 = vmax.f32 %v755_v63, 0.0  ;;  %v770_v5 = vadd.f32 %v1100_v3, %v673_v1  ;;  %v778_v10 = vmul.f32 %v1258_v15, %v774_v2 }
 0x62a   : > { %v764_v7 = vpop.f32.mrf.mxu0 }
 0x62b   : > { %v777_v8 = vmul.f32 %v1258_v15, %v773_v4  ;;  %v765_v9 = vadd.f32 %v764_v7, %v668_v6  ;;  %v776_v11 = vmax.f32 %v770_v5, 0.0 }
 0x62d   : > { %v775_v12 = vmax.f32 %v765_v9, 0.0  ;;  %1107 = vmatprep.mubr.msk.f32.mxu1 %vm422_vm4, %v777_v8  ;;  %v780_v14 = vmul.f32 %v1258_v15, %v776_v11 }
 0x62e   : > { %1108 = vmatmul.mubr.msk.f32.vlgmr.msra.gmra.mxu1 %vm422_vm4, %v778_v10 }
 0x62f   : > { %v779_v13 = vmul.f32 %v1258_v15, %v775_v12  ;;  %v881_v15 = vld [vmem:[%s1363_s9] sm:$0xff] }
 0x631   : > { %1110 = vmatprep.mubr.msk.f32.mxu1 %vm422_vm4, %v779_v13 }
 0x632   : > { %1111 = vmatmul.mubr.msk.f32.gmra.mxu1 %vm422_vm4, %v780_v14 }
 0x633   : > { %1121 = vmatprep.mubr.msk.f32.mxu1 %vm1155_vm3, %v1151_v0 }
 0x6ee   : > { %v1109_v16 = vpop.f32.mrf.mxu1 }
 0x6f0   : > { %v862_v17 = vpop.f32.mrf.mxu1 }
 0x6f2   : > { %v1112_v18 = vpop.f32.mrf.mxu1 }
 0x6f3   : > { %1114 = vmatpush3.msra.mxu1 %v1112_v18 }
 0x6f4   : > { %v872_v19 = vpop.f32.mrf.mxu1  ;;  %1115 = vmatprep.subr.mxu1 %v1151_v0 }
 0x6f5   : > { %1116 = vmatpush3.msra.mxu1 %v872_v19 }
 0x6f6   : > { %1117 = vmatprep.subr.mxu1 %v1151_v0 }
 0x6f7   : > { %1118 = vmatpush3.msra.mxu1 %v1109_v16 }
 0x6f8   : > { %1119 = vmatprep.subr.mxu1 %v1151_v0 }
 0x6f9   : > { %1120 = vmatpush3.msra.mxu1 %v862_v17 }
 0x6fa   : > { %1122 = vmatmul.mubr.msk.f32.vlgmr.msra.gmra.mxu1 %vm883_vm6, %v881_v15 }
 0x7ba   : > { %v953_v21 = vpop.f32.mrf.mxu1 }
 0x7bb   : > { %v954_v22 = vadd.f32 %v953_v21, %v882_v20 }
 0x7bc   : > { %v1123_v23 = vpop.f32.mrf.mxu1 }
 0x7bd   : > { %958 = vst.msk [vmem:[%s381_s24] sm:$0xff] %vm957_vm7, %v954_v22 }
 0x7be PF: > { %s21_s17 = sadd.s32 1, %s1149_s17  }
 0x7bf   : > { %p18_p4 = scmp.ge.s32.totalorder %s21_s17, 4  }
 0x7c1   :  { %20 = sbr.rel (!%p18_p4) target bundleno = 1 (0x1), region = 94 }

</bundles_post_ra>
